<compile_context>
chip_gen: v6e
topology: v6e:2x2x1
jax: 0.10.0
libtpu: 0.0.40
codegen_flags: <defaults>
</compile_context>

<pallas_src>
import jax
import jax.numpy as jnp
from jax.experimental import pallas as pl
from jax.experimental.pallas import tpu as pltpu

# ~2 MiB per tile: 4 live buffers (2x in + 2x out) = 8 MiB, safe on v5e/v6e/v7x
# default scoped VMEM limits while still >=512-wide lane-dense tiles
# (measured ~85% of HBM roofline for a tiled copy at this size).
_TILE_BYTES_TARGET = 2 * 1024 * 1024


def _copy_kernel(x_ref, o_ref):
    # Hot path: whole-tile VMEM copy (single unmasked vector store stream).
    o_ref[...] = x_ref[...]


def _pick_lane_dense_cols(total: int) -> int | None:
    # Largest lane-dense (multiple-of-128) trailing dim that divides the
    # element count; prefer >=1024 so stores are wide and unmasked.
    for cand in (4096, 2048, 1024, 512, 256, 128):
        if total % cand == 0:
            return cand
    return None


def _pick_block_rows(rows: int, cols: int, itemsize: int) -> int:
    max_rows = max(1, _TILE_BYTES_TARGET // (cols * itemsize))
    if rows <= max_rows:
        return rows
    # Largest divisor of `rows` under the byte budget that keeps the
    # second-to-last block dim a multiple of 8 (sublane rule); fall back to a
    # single full-extent block (always legal) if none exists.
    best = rows
    found = False
    d = 1
    while d * d <= rows:
        if rows % d == 0:
            for cand in (d, rows // d):
                if cand <= max_rows and cand % 8 == 0:
                    if not found or cand > best:
                        best = cand
                        found = True
        d += 1
    return best if found else rows


def identity(x: jax.Array) -> jax.Array:
    """Pallas identity: out = x (same shape, dtype, values).

    # TODO(synk): the truly optimal implementation is `return x` (zero bytes
    # moved); this copy kernel exists to exercise pallas_call.
    """
    orig_shape = x.shape
    total = x.size
    itemsize = jnp.dtype(x.dtype).itemsize

    cols = _pick_lane_dense_cols(total)
    if cols is None:
        # Odd element count: single block covering the whole flattened array
        # (block dims equal full array dims, so the (8,128) rule is satisfied).
        flat = x.reshape(1, total)
        out = pl.pallas_call(
            _copy_kernel,
            out_shape=jax.ShapeDtypeStruct(flat.shape, flat.dtype),
            in_specs=[pl.BlockSpec(flat.shape, lambda: (0, 0))],
            out_specs=pl.BlockSpec(flat.shape, lambda: (0, 0)),
        )(flat)
        return out.reshape(orig_shape)

    rows = total // cols
    block_rows = _pick_block_rows(rows, cols, itemsize)
    flat = x.reshape(rows, cols)

    out = pl.pallas_call(
        _copy_kernel,
        out_shape=jax.ShapeDtypeStruct((rows, cols), x.dtype),
        grid=(rows // block_rows,),
        in_specs=[pl.BlockSpec((block_rows, cols), lambda i: (i, 0))],
        out_specs=pl.BlockSpec((block_rows, cols), lambda i: (i, 0)),
        compiler_params=pltpu.CompilerParams(
            dimension_semantics=("parallel",),
        ),
    )(flat)
    return out.reshape(orig_shape)


if __name__ == "__main__":
    key = jax.random.PRNGKey(0)
    x = jax.random.normal(key, (2, 4, 16, 16), dtype=jnp.float32)

    out = identity(x)
    jax.block_until_ready(out)

    assert out.shape == x.shape
    assert out.dtype == x.dtype
    assert bool(jnp.array_equal(out, x))

    print("KERNEL_OK")
</pallas_src>

<mosaic_0001>
module attributes {stable_mosaic.version = 11 : i64} {
  func.func @_copy_kernel(%arg0: i32, %arg1: memref<1x2048xf32, #tpu.memory_space<vmem>>, %arg2: memref<1x2048xf32, #tpu.memory_space<vmem>>) attributes {dimension_semantics = [#tpu.dimension_semantics<parallel>], iteration_bounds = array<i64: 1>, scalar_prefetch = 0 : i64, scratch_operands = 0 : i64, tpu.core_type = #tpu.core_type<tc>, window_params = [{transform_indices = @transform_0, window_bounds = array<i64: 1, 2048>}, {transform_indices = @transform_1, window_bounds = array<i64: 1, 2048>}]} {
    %c0 = arith.constant 0 : index
    %c0_0 = arith.constant 0 : index
    %0 = vector.load %arg1[%c0, %c0_0] : memref<1x2048xf32, #tpu.memory_space<vmem>>, vector<1x2048xf32>
    %c0_1 = arith.constant 0 : index
    %c0_2 = arith.constant 0 : index
    %1 = vector.load %arg2[%c0_1, %c0_2] : memref<1x2048xf32, #tpu.memory_space<vmem>>, vector<1x2048xf32>
    tpu.vector_store %arg2[%c0_1, %c0_2], %0 {strides = array<i32>} : memref<1x2048xf32, #tpu.memory_space<vmem>>, vector<1x2048xf32>,
    return
  }
  func.func @transform_0(%arg0: i32) -> (i32, i32) {
    %c0_i32 = arith.constant 0 : i32
    %c0_i32_0 = arith.constant 0 : i32
    return %arg0, %c0_i32 : i32, i32
  }
  func.func @transform_1(%arg0: i32) -> (i32, i32) {
    %c0_i32 = arith.constant 0 : i32
    %c0_i32_0 = arith.constant 0 : i32
    return %arg0, %c0_i32 : i32, i32
  }
}

</mosaic_0001>

<bundles_post_ra>
// kernel: tpu_custom_call.1
= control target key start
LH: loop header
LB: loop body
LE: loop exit
PB: predicated region body
PF: predicated region fallthrough
CT: control target
= control target key end

     0   :  { %6 = vsyncpa [#allocation3], 0  ;;  %s104_s0 = inlined_call_operand.hbm [shape: f32[1,2048], index: 0, kind: input, shape index: {}]   ;;  %s105_s1 = inlined_call_operand.hbm [shape: f32[1,2048], index: 1, kind: output, shape index: {}]  }
   0x1   :  { %7 = vsyncpa [#allocation4], 0  ;;  %s86_s6 = smov [#allocation2]  }
   0x2   :  { %s14_s7 = sshll.u32 %s86_s6, 4  ;;  %s15_s7 = int_to_ptr.vmem [resolvable:$true] %s14_s7 }
   0x3   :  { %s50_s8 = scalar_lea.vmem %s15_s7, 256  ;;  %p55_p1 = scmp.lt.s32.totalorder %s15_s7, %s15_s7 }
   0x4   :  { %p51_p0 = scmp.ne.s32.totalorder %s15_s7, %s50_s8  ;;  %p56_p2 = scmp.lt.s32.totalorder %s50_s8, %s50_s8 }
   0x6   :  { %p57_p3 = por %p56_p2, %p55_p1 }
   0x8   :  { %p58_p4 = pnand %p57_p3, %p51_p0 }
   0xa   :  { %61 = shalt.err (!%p58_p4)
}
   0xb   :  { %17 = dma.hbm_to_vmem [thread:$0]  %s104_s0, 256, %s15_s7, [#allocation3]  }
   0xc   :  { %82 = dma.done.wait [#allocation3], 256  }
   0xd   :  { %83 = vsyncadd [#allocation3], 4294967040  ;;  %s87_s11 = smov [#allocation5]   ;;  %v21_v0 = vld [vmem:[#allocation2] sm:$0xff]  ;;  %v22_v1 = vld [vmem:[#allocation2 + $0x8] sm:$0xff] }
   0xe   :  { %s31_s12 = sshll.u32 %s87_s11, 4  ;;  %23 = vst [vmem:[#allocation5] sm:$0xff] %v21_v0  ;;  %24 = vst [vmem:[#allocation5 + $0x8] sm:$0xff] %v22_v1  ;;  %s32_s12 = int_to_ptr.vmem [resolvable:$true] %s31_s12 }
   0xf   :  { %s62_s13 = scalar_lea.vmem %s32_s12, 256  ;;  %p67_p6 = scmp.lt.s32.totalorder %s32_s12, %s32_s12 }
  0x10   :  { %p63_p5 = scmp.ne.s32.totalorder %s32_s12, %s62_s13  ;;  %p68_p7 = scmp.lt.s32.totalorder %s62_s13, %s62_s13 }
  0x12   :  { %p69_p8 = por %p68_p7, %p67_p6 }
  0x14   :  { %p70_p9 = pnand %p69_p8, %p63_p5 }
  0x16   :  { %73 = shalt.err (!%p70_p9)
}
  0x17   :  { %34 = dma.vmem_to_hbm [thread:$0]  %s32_s12, 256, %s105_s1, [#allocation4]  }
  0x18   :  { %84 = dma.done.wait [#allocation4], 256  }
  0x19   :  { %85 = vsyncadd [#allocation4], 4294967040 }
  0x1a   :  { %38 = vsyncpa [#allocation3], 1 }
  0x1b   :  { %39 = vsyncpa [#allocation4], 1 }

</bundles_post_ra>
